<compile_context>
chip_gen: v6e
topology: v6e:2x2x1
jax: 0.10.0
libtpu: 0.0.40
codegen_flags: <defaults>
</compile_context>

<pallas_src>
import functools
import math

import jax
import jax.numpy as jnp
from jax.experimental import pallas as pl
from jax.experimental.pallas import tpu as pltpu


# ----------------------------------------------------------------------------
# Pallas kernel
# ----------------------------------------------------------------------------
def _make_covar_kernel(n_lin: int, diag_positions):
    """n_lin = number of Linear layers (phi layers + output layer).

    Kernel ref order: inp, (Wt, b) * n_lin, out
      inp : (2, TM)     -- rows on the lane axis
      Wt  : (out, in)   -- transposed torch weight
      b   : (out, 1)
      out : (L, TM)
    ReLU follows every phi layer except the last phi layer (torch drops the
    trailing ReLU); no activation after the output layer.
    """

    def kernel(inp_ref, *rest):
        param_refs = rest[:-1]
        out_ref = rest[-1]

        x = inp_ref[...]                                       # (2, TM)

        # ---- layer 0 (in_features == 2): VPU broadcast-FMA, skip the MXU ---
        w0 = param_refs[0][...]                                # (h0, 2)
        b0 = param_refs[1][...]                                # (h0, 1)
        x = w0[:, 0:1] * x[0:1, :] + w0[:, 1:2] * x[1:2, :] + b0
        if 0 < n_lin - 2:
            x = jnp.maximum(x, 0.0)

        # ---- remaining layers on the MXU -----------------------------------
        for i in range(1, n_lin):
            wt = param_refs[2 * i][...]                        # (out_i, in_i)
            bi = param_refs[2 * i + 1][...]                    # (out_i, 1)
            x = jnp.dot(wt, x, preferred_element_type=jnp.float32) + bi
            if i < n_lin - 2:
                x = jnp.maximum(x, 0.0)

        # ---- flat Cholesky (L, TM); softplus only the static diagonal rows -
        out_ref[...] = x
        for k in diag_positions:                               # S static rows
            row = x[k:k + 1, :]                                # (1, TM)
            # torch F.softplus (beta=1, threshold=20)
            sp = jnp.where(
                row > 20.0, row, jnp.log1p(jnp.exp(jnp.minimum(row, 20.0)))
            )
            out_ref[k:k + 1, :] = sp

    return kernel


# ----------------------------------------------------------------------------
# Wrapper (parameter handling, padding, gather into tril matrix)
# ----------------------------------------------------------------------------
LANE = 128            # lane width; row-tile granularity
MAX_ROW_TILE = 1024   # rows per grid step; a few hundred KB of VMEM at most


def _round_up(x, m):
    return ((x + m - 1) // m) * m


def init_params(key, output_sizes, state_space_size, dtype=jnp.float32):
    """PyTorch-nn.Linear-style uniform init; weights stored as (in, out)."""
    final_output_size = (state_space_size * (state_space_size + 1)) // 2
    dims = [2] + list(output_sizes) + [final_output_size]
    params = []
    for fan_in, fan_out in zip(dims[:-1], dims[1:]):
        key, kw, kb = jax.random.split(key, 3)
        bound = 1.0 / float(fan_in) ** 0.5
        w = jax.random.uniform(kw, (fan_in, fan_out), dtype, -bound, bound)
        b = jax.random.uniform(kb, (1, fan_out), dtype, -bound, bound)
        params.append((w, b))
    return params


@functools.partial(jax.jit, static_argnames=("state_space_size",))
def covar_generator_forward(sigma2_schedule, t_schedule, params, state_space_size):
    """Equivalent of TimeSensitiveNoiseProcessCovarGenerator.forward.

    sigma2_schedule, t_schedule: shape [..., T-1]  (float32)
    returns: [..., T-1, S, S]
    """
    assert sigma2_schedule.shape == t_schedule.shape
    S = state_space_size
    L = (S * (S + 1)) // 2

    batch_shape = sigma2_schedule.shape
    n = max(int(math.prod(batch_shape)), 1)

    # Transposed (feature-major) input: flattened rows live on the lane axis.
    inp_t = jnp.stack(
        [sigma2_schedule.reshape(-1), t_schedule.reshape(-1)], axis=0
    ).astype(jnp.float32)                                      # (2, n)

    # Row tiling: lane-aligned, as large as MAX_ROW_TILE, but keep >= 2 grid
    # steps when the problem allows it (v7x megacore).
    n_lanes = _round_up(n, LANE)
    tm = min(MAX_ROW_TILE, n_lanes)
    if tm == n_lanes and n_lanes >= 2 * LANE:
        tm = max(LANE, (n_lanes // 2 // LANE) * LANE)
    n_pad = _round_up(n_lanes, tm)
    inp_t = jnp.pad(inp_t, ((0, 0), (0, n_pad - n)))

    n_lin = len(params)
    # Kernel-side layout: weights as (out, in), biases as (out, 1).
    flat_params = []
    for (w, b) in params:
        flat_params.extend([w.T, b.T])

    # Diagonal positions within the row-major lower-triangle flattening.
    diag_positions = tuple(i * (i + 3) // 2 for i in range(S))
    kernel = _make_covar_kernel(n_lin, diag_positions)

    in_specs = [pl.BlockSpec((2, tm), lambda i: (0, i))]
    for p in flat_params:
        in_specs.append(pl.BlockSpec(p.shape, lambda i: (0, 0)))

    flat_chol_t = pl.pallas_call(
        kernel,
        out_shape=jax.ShapeDtypeStruct((L, n_pad), jnp.float32),
        grid=(n_pad // tm,),
        in_specs=in_specs,
        out_specs=pl.BlockSpec((L, tm), lambda i: (0, i)),
        compiler_params=pltpu.CompilerParams(
            dimension_semantics=("parallel",)
        ),
    )(inp_t, *flat_params)

    # (L, n_pad) -> [..., L]   (padded rows sliced off before the transpose)
    flat_chol = flat_chol_t[:, :n].T.reshape(*batch_shape, L)

    # Static gather into the (S, S) lower-triangular matrix (column L = 0).
    flat_ext = jnp.concatenate(
        [flat_chol, jnp.zeros((*batch_shape, 1), jnp.float32)], axis=-1
    )
    gather_idx = []
    for r in range(S):
        for c in range(S):
            gather_idx.append(r * (r + 1) // 2 + c if r >= c else L)
    gather_idx = jnp.asarray(gather_idx, dtype=jnp.int32)
    out = jnp.take(flat_ext, gather_idx, axis=-1).reshape(*batch_shape, S, S)
    return out


# ----------------------------------------------------------------------------
# Pure-JAX reference (for correctness check)
# ----------------------------------------------------------------------------
def reference_forward(sigma2_schedule, t_schedule, params, state_space_size):
    S = state_space_size
    x = jnp.stack([sigma2_schedule, t_schedule], axis=-1).astype(jnp.float32)
    n_lin = len(params)
    for i, (w, b) in enumerate(params):
        x = x @ w + b[0]
        if i < n_lin - 2:
            x = jnp.maximum(x, 0.0)
    rows, cols = jnp.tril_indices(S)
    out = jnp.zeros((*sigma2_schedule.shape, S, S), dtype=jnp.float32)
    out = out.at[..., rows, cols].set(x)
    diag = jnp.diagonal(out, axis1=-2, axis2=-1)
    diag_sp = jax.nn.softplus(diag)
    idx = jnp.arange(S)
    out = out.at[..., idx, idx].set(diag_sp)
    return out


# ----------------------------------------------------------------------------
# Main
# ----------------------------------------------------------------------------
if __name__ == "__main__":
    key = jax.random.PRNGKey(0)
    k_params, k_sigma, k_t = jax.random.split(key, 3)

    output_sizes = [32, 32]
    state_space_size = 4
    B, Tm1 = 2, 8  # inputs of shape [B, T-1]

    params = init_params(k_params, output_sizes, state_space_size)

    sigma2_schedule = jax.random.uniform(k_sigma, (B, Tm1), jnp.float32, 0.0, 1.0)
    # t_schedule must satisfy 0 <= t < 1 (checked by the torch module)
    t_schedule = jax.random.uniform(k_t, (B, Tm1), jnp.float32, 0.0, 0.999)

    out = covar_generator_forward(
        sigma2_schedule, t_schedule, params, state_space_size
    )
    out = jax.block_until_ready(out)

    ref = reference_forward(sigma2_schedule, t_schedule, params, state_space_size)
    assert out.shape == (B, Tm1, state_space_size, state_space_size), out.shape
    assert jnp.allclose(out, ref, atol=1e-5, rtol=1e-5), (
        float(jnp.max(jnp.abs(out - ref)))
    )

    print("KERNEL_OK")
</pallas_src>

<mosaic_0001>
module attributes {stable_mosaic.version = 11 : i64} {
  func.func @kernel(%arg0: i32, %arg1: memref<2x128xf32, #tpu.memory_space<vmem>>, %arg2: memref<32x2xf32, #tpu.memory_space<vmem>>, %arg3: memref<32x1xf32, #tpu.memory_space<vmem>>, %arg4: memref<32x32xf32, #tpu.memory_space<vmem>>, %arg5: memref<32x1xf32, #tpu.memory_space<vmem>>, %arg6: memref<10x32xf32, #tpu.memory_space<vmem>>, %arg7: memref<10x1xf32, #tpu.memory_space<vmem>>, %arg8: memref<10x128xf32, #tpu.memory_space<vmem>>) attributes {dimension_semantics = [#tpu.dimension_semantics<parallel>], iteration_bounds = array<i64: 1>, scalar_prefetch = 0 : i64, scratch_operands = 0 : i64, tpu.core_type = #tpu.core_type<tc>, window_params = [{transform_indices = @transform_0, window_bounds = array<i64: 2, 128>}, {pipeline_mode = #tpu.pipeline_mode<synchronous>, transform_indices = @transform_1, window_bounds = array<i64: 32, 2>}, {pipeline_mode = #tpu.pipeline_mode<synchronous>, transform_indices = @transform_2, window_bounds = array<i64: 32, 1>}, {pipeline_mode = #tpu.pipeline_mode<synchronous>, transform_indices = @transform_3, window_bounds = array<i64: 32, 32>}, {pipeline_mode = #tpu.pipeline_mode<synchronous>, transform_indices = @transform_4, window_bounds = array<i64: 32, 1>}, {pipeline_mode = #tpu.pipeline_mode<synchronous>, transform_indices = @transform_5, window_bounds = array<i64: 10, 32>}, {pipeline_mode = #tpu.pipeline_mode<synchronous>, transform_indices = @transform_6, window_bounds = array<i64: 10, 1>}, {transform_indices = @transform_7, window_bounds = array<i64: 10, 128>}]} {
    %c0 = arith.constant 0 : index
    %c0_0 = arith.constant 0 : index
    %0 = vector.load %arg1[%c0, %c0_0] : memref<2x128xf32, #tpu.memory_space<vmem>>, vector<2x128xf32>
    %c0_1 = arith.constant 0 : index
    %c0_2 = arith.constant 0 : index
    %1 = vector.load %arg2[%c0_1, %c0_2] : memref<32x2xf32, #tpu.memory_space<vmem>>, vector<32x2xf32>
    %c0_3 = arith.constant 0 : index
    %c0_4 = arith.constant 0 : index
    %2 = vector.load %arg3[%c0_3, %c0_4] : memref<32x1xf32, #tpu.memory_space<vmem>>, vector<32x1xf32>
    %3 = vector.extract_strided_slice %1 {offsets = [0, 0], sizes = [32, 1], strides = [1, 1]} : vector<32x2xf32> to vector<32x1xf32>
    %4 = vector.extract_strided_slice %0 {offsets = [0, 0], sizes = [1, 128], strides = [1, 1]} : vector<2x128xf32> to vector<1x128xf32>
    %5 = vector.broadcast %3 : vector<32x1xf32> to vector<32x128xf32>
    %6 = vector.broadcast %4 : vector<1x128xf32> to vector<32x128xf32>
    %7 = arith.mulf %5, %6 : vector<32x128xf32>
    %8 = vector.extract_strided_slice %1 {offsets = [0, 1], sizes = [32, 1], strides = [1, 1]} : vector<32x2xf32> to vector<32x1xf32>
    %9 = vector.extract_strided_slice %0 {offsets = [1, 0], sizes = [1, 128], strides = [1, 1]} : vector<2x128xf32> to vector<1x128xf32>
    %10 = vector.broadcast %8 : vector<32x1xf32> to vector<32x128xf32>
    %11 = vector.broadcast %9 : vector<1x128xf32> to vector<32x128xf32>
    %12 = arith.mulf %10, %11 : vector<32x128xf32>
    %13 = arith.addf %7, %12 : vector<32x128xf32>
    %14 = vector.broadcast %2 : vector<32x1xf32> to vector<32x128xf32>
    %15 = arith.addf %13, %14 : vector<32x128xf32>
    %cst = arith.constant 0.000000e+00 : f32
    %16 = vector.broadcast %cst : f32 to vector<32x128xf32>
    %17 = arith.maximumf %15, %16 : vector<32x128xf32>
    %c0_5 = arith.constant 0 : index
    %c0_6 = arith.constant 0 : index
    %18 = vector.load %arg4[%c0_5, %c0_6] : memref<32x32xf32, #tpu.memory_space<vmem>>, vector<32x32xf32>
    %c0_7 = arith.constant 0 : index
    %c0_8 = arith.constant 0 : index
    %19 = vector.load %arg5[%c0_7, %c0_8] : memref<32x1xf32, #tpu.memory_space<vmem>>, vector<32x1xf32>
    %cst_9 = arith.constant dense<0.000000e+00> : vector<32x128xf32>
    %20 = tpu.matmul %18, %17, %cst_9 {dimension_numbers = #tpu.dot_dimension_numbers<[1], [0], [0], [1], [0, 0, 1, 1], [], []>} : vector<32x32xf32>, vector<32x128xf32>, vector<32x128xf32> -> vector<32x128xf32>
    %21 = vector.broadcast %19 : vector<32x1xf32> to vector<32x128xf32>
    %22 = arith.addf %20, %21 : vector<32x128xf32>
    %c0_10 = arith.constant 0 : index
    %c0_11 = arith.constant 0 : index
    %23 = vector.load %arg6[%c0_10, %c0_11] : memref<10x32xf32, #tpu.memory_space<vmem>>, vector<10x32xf32>
    %c0_12 = arith.constant 0 : index
    %c0_13 = arith.constant 0 : index
    %24 = vector.load %arg7[%c0_12, %c0_13] : memref<10x1xf32, #tpu.memory_space<vmem>>, vector<10x1xf32>
    %cst_14 = arith.constant dense<0.000000e+00> : vector<10x128xf32>
    %25 = tpu.matmul %23, %22, %cst_14 {dimension_numbers = #tpu.dot_dimension_numbers<[1], [0], [0], [1], [0, 0, 1, 1], [], []>} : vector<10x32xf32>, vector<32x128xf32>, vector<10x128xf32> -> vector<10x128xf32>
    %26 = vector.broadcast %24 : vector<10x1xf32> to vector<10x128xf32>
    %27 = arith.addf %25, %26 : vector<10x128xf32>
    %c0_15 = arith.constant 0 : index
    %c0_16 = arith.constant 0 : index
    %28 = vector.load %arg8[%c0_15, %c0_16] : memref<10x128xf32, #tpu.memory_space<vmem>>, vector<10x128xf32>
    tpu.vector_store %arg8[%c0_15, %c0_16], %27 {strides = array<i32>} : memref<10x128xf32, #tpu.memory_space<vmem>>, vector<10x128xf32>,
    %29 = vector.extract_strided_slice %27 {offsets = [0, 0], sizes = [1, 128], strides = [1, 1]} : vector<10x128xf32> to vector<1x128xf32>
    %cst_17 = arith.constant 2.000000e+01 : f32
    %30 = vector.broadcast %cst_17 : f32 to vector<1x128xf32>
    %31 = arith.cmpf ogt, %29, %30 : vector<1x128xf32>
    %cst_18 = arith.constant 2.000000e+01 : f32
    %32 = vector.broadcast %cst_18 : f32 to vector<1x128xf32>
    %33 = arith.minimumf %29, %32 : vector<1x128xf32>
    %34 = math.exp %33 : vector<1x128xf32>
    %35 = math.log1p %34 : vector<1x128xf32>
    %36 = arith.select %31, %29, %35 : vector<1x128xi1>, vector<1x128xf32>
    %c0_19 = arith.constant 0 : index
    %c0_20 = arith.constant 0 : index
    %37 = vector.load %arg8[%c0_19, %c0_20] : memref<10x128xf32, #tpu.memory_space<vmem>>, vector<1x128xf32>
    tpu.vector_store %arg8[%c0_19, %c0_20], %36 {strides = array<i32>} : memref<10x128xf32, #tpu.memory_space<vmem>>, vector<1x128xf32>,
    %38 = vector.extract_strided_slice %27 {offsets = [2, 0], sizes = [1, 128], strides = [1, 1]} : vector<10x128xf32> to vector<1x128xf32>
    %cst_21 = arith.constant 2.000000e+01 : f32
    %39 = vector.broadcast %cst_21 : f32 to vector<1x128xf32>
    %40 = arith.cmpf ogt, %38, %39 : vector<1x128xf32>
    %cst_22 = arith.constant 2.000000e+01 : f32
    %41 = vector.broadcast %cst_22 : f32 to vector<1x128xf32>
    %42 = arith.minimumf %38, %41 : vector<1x128xf32>
    %43 = math.exp %42 : vector<1x128xf32>
    %44 = math.log1p %43 : vector<1x128xf32>
    %45 = arith.select %40, %38, %44 : vector<1x128xi1>, vector<1x128xf32>
    %c2 = arith.constant 2 : index
    %c0_23 = arith.constant 0 : index
    %46 = vector.load %arg8[%c2, %c0_23] : memref<10x128xf32, #tpu.memory_space<vmem>>, vector<1x128xf32>
    tpu.vector_store %arg8[%c2, %c0_23], %45 {strides = array<i32>} : memref<10x128xf32, #tpu.memory_space<vmem>>, vector<1x128xf32>,
    %47 = vector.extract_strided_slice %27 {offsets = [5, 0], sizes = [1, 128], strides = [1, 1]} : vector<10x128xf32> to vector<1x128xf32>
    %cst_24 = arith.constant 2.000000e+01 : f32
    %48 = vector.broadcast %cst_24 : f32 to vector<1x128xf32>
    %49 = arith.cmpf ogt, %47, %48 : vector<1x128xf32>
    %cst_25 = arith.constant 2.000000e+01 : f32
    %50 = vector.broadcast %cst_25 : f32 to vector<1x128xf32>
    %51 = arith.minimumf %47, %50 : vector<1x128xf32>
    %52 = math.exp %51 : vector<1x128xf32>
    %53 = math.log1p %52 : vector<1x128xf32>
    %54 = arith.select %49, %47, %53 : vector<1x128xi1>, vector<1x128xf32>
    %c5 = arith.constant 5 : index
    %c0_26 = arith.constant 0 : index
    %55 = vector.load %arg8[%c5, %c0_26] : memref<10x128xf32, #tpu.memory_space<vmem>>, vector<1x128xf32>
    tpu.vector_store %arg8[%c5, %c0_26], %54 {strides = array<i32>} : memref<10x128xf32, #tpu.memory_space<vmem>>, vector<1x128xf32>,
    %56 = vector.extract_strided_slice %27 {offsets = [9, 0], sizes = [1, 128], strides = [1, 1]} : vector<10x128xf32> to vector<1x128xf32>
    %cst_27 = arith.constant 2.000000e+01 : f32
    %57 = vector.broadcast %cst_27 : f32 to vector<1x128xf32>
    %58 = arith.cmpf ogt, %56, %57 : vector<1x128xf32>
    %cst_28 = arith.constant 2.000000e+01 : f32
    %59 = vector.broadcast %cst_28 : f32 to vector<1x128xf32>
    %60 = arith.minimumf %56, %59 : vector<1x128xf32>
    %61 = math.exp %60 : vector<1x128xf32>
    %62 = math.log1p %61 : vector<1x128xf32>
    %63 = arith.select %58, %56, %62 : vector<1x128xi1>, vector<1x128xf32>
    %c9 = arith.constant 9 : index
    %c0_29 = arith.constant 0 : index
    %64 = vector.load %arg8[%c9, %c0_29] : memref<10x128xf32, #tpu.memory_space<vmem>>, vector<1x128xf32>
    tpu.vector_store %arg8[%c9, %c0_29], %63 {strides = array<i32>} : memref<10x128xf32, #tpu.memory_space<vmem>>, vector<1x128xf32>,
    return
  }
  func.func @transform_0(%arg0: i32) -> (i32, i32) {
    %c0_i32 = arith.constant 0 : i32
    %c0_i32_0 = arith.constant 0 : i32
    return %c0_i32, %arg0 : i32, i32
  }
  func.func @transform_1(%arg0: i32) -> (i32, i32) {
    %c0_i32 = arith.constant 0 : i32
    %c0_i32_0 = arith.constant 0 : i32
    %c0_i32_1 = arith.constant 0 : i32
    return %c0_i32, %c0_i32_0 : i32, i32
  }
  func.func @transform_2(%arg0: i32) -> (i32, i32) {
    %c0_i32 = arith.constant 0 : i32
    %c0_i32_0 = arith.constant 0 : i32
    %c0_i32_1 = arith.constant 0 : i32
    return %c0_i32, %c0_i32_0 : i32, i32
  }
  func.func @transform_3(%arg0: i32) -> (i32, i32) {
    %c0_i32 = arith.constant 0 : i32
    %c0_i32_0 = arith.constant 0 : i32
    %c0_i32_1 = arith.constant 0 : i32
    return %c0_i32, %c0_i32_0 : i32, i32
  }
  func.func @transform_4(%arg0: i32) -> (i32, i32) {
    %c0_i32 = arith.constant 0 : i32
    %c0_i32_0 = arith.constant 0 : i32
    %c0_i32_1 = arith.constant 0 : i32
    return %c0_i32, %c0_i32_0 : i32, i32
  }
  func.func @transform_5(%arg0: i32) -> (i32, i32) {
    %c0_i32 = arith.constant 0 : i32
    %c0_i32_0 = arith.constant 0 : i32
    %c0_i32_1 = arith.constant 0 : i32
    return %c0_i32, %c0_i32_0 : i32, i32
  }
  func.func @transform_6(%arg0: i32) -> (i32, i32) {
    %c0_i32 = arith.constant 0 : i32
    %c0_i32_0 = arith.constant 0 : i32
    %c0_i32_1 = arith.constant 0 : i32
    return %c0_i32, %c0_i32_0 : i32, i32
  }
  func.func @transform_7(%arg0: i32) -> (i32, i32) {
    %c0_i32 = arith.constant 0 : i32
    %c0_i32_0 = arith.constant 0 : i32
    return %c0_i32, %arg0 : i32, i32
  }
}

</mosaic_0001>

<bundles_post_ra>
// kernel: covar_generator_forward.1
= control target key start
LH: loop header
LB: loop body
LE: loop exit
PB: predicated region body
PF: predicated region fallthrough
CT: control target
= control target key end

     0   :  { %v440_v0 = vmov 1   ;;  %v441_v1 = vmov 0   ;;  %vm147_vm0 = vcmask 261120   ;;  %v55_v17 = vlaneseq  ;;  %s563_s1 = inlined_call_operand.vmem [shape: f32[32,2], index: 1, kind: input, shape index: {}]   ;;  %s564_s2 = inlined_call_operand.vmem [shape: f32[32,1], index: 2, kind: input, shape index: {}]   ;;  %s565_s4 = inlined_call_operand.vmem [shape: f32[32,1], index: 4, kind: input, shape index: {}]   ;;  %s566_s6 = inlined_call_operand.vmem [shape: f32[10,1], index: 6, kind: input, shape index: {}]   ;;  %s567_s3 = inlined_call_operand.vmem [shape: f32[32,32], index: 3, kind: input, shape index: {}]   ;;  %s568_s0 = inlined_call_operand.vmem [shape: f32[2,128], index: 0, kind: input, shape index: {}]   ;;  %s569_s5 = inlined_call_operand.vmem [shape: f32[10,32], index: 5, kind: input, shape index: {}]   ;;  %s570_s7 = inlined_call_operand.vmem [shape: f32[10,128], index: 7, kind: output, shape index: {}]  }
   0x1   :  { %425 = vset.pattern.permute.xlu0 %v440_v0  ;;  %426 = vset.pattern.permute.xlu1 %v441_v1  ;;  %v30_v2 = vld [vmem:[%s563_s1 + $0x18] sm:$0xff]  ;;  %v29_v3 = vld [vmem:[%s563_s1 + $0x10] sm:$0xff]  ;;  %v28_v4 = vld [vmem:[%s563_s1 + $0x8] sm:$0xff] }
   0x2   :  { %76 = vperm.xlu0 %425, %v30_v2   ;;  %47 = vperm.xlu1 %426, %v29_v3   ;;  %v27_v5 = vld [vmem:[%s563_s1] sm:$0xff]  ;;  %v34_v6 = vld [vmem:[%s564_s2 + $0x18] sm:$0xff]  ;;  %v32_v7 = vld [vmem:[%s564_s2 + $0x8] sm:$0xff]  ;;  %v56_v18 = vshrl.u32 %v55_v17, 7 }
   0x3   :  { %v126_v8 = vld [vmem:[%s565_s4 + $0x18] sm:$0xff]  ;;  %v33_v9 = vld [vmem:[%s564_s2 + $0x10] sm:$0xff]  ;;  %v124_v10 = vld [vmem:[%s565_s4 + $0x8] sm:$0xff] }
   0x4   :  { %v31_v11 = vld [vmem:[%s564_s2] sm:$0xff]  ;;  %v125_v14 = vld [vmem:[%s565_s4 + $0x10] sm:$0xff]  ;;  %v248_v16 = vld [vmem:[%s566_s6 + $0x8] sm:$0x3]  ;;  %v81_v21 = vsub.s32 1, %v56_v18  ;;  %v57_v22 = vsub.s32 0, %v56_v18 }
   0x5   :  { %v247_v12 = vld [vmem:[%s566_s6] sm:$0xff]  ;;  %v120_v56 = vld [vmem:[%s567_s3 + $0x8] sm:$0xff]  ;;  %v121_v57 = vld [vmem:[%s567_s3 + $0x10] sm:$0xff] }
   0x6   :  { %427 = vset.pattern.permute.xlu1 %v440_v0  ;;  %68 = vperm.xlu0 %425, %v28_v4   ;;  %v119_v13 = vld [vmem:[%s567_s3] sm:$0xff]  ;;  %v122_v58 = vld [vmem:[%s567_s3 + $0x18] sm:$0xff] }
   0x7   :  { %72 = vperm.xlu1 %427, %v29_v3   ;;  %406 = vmatprep.mubr.msk.f32.mxu0 %vm147_vm0, %v119_v13  ;;  %v123_v15 = vld [vmem:[%s565_s4] sm:$0xff] }
   0x8   :  { %v26_v24 = vld [vmem:[%s568_s0] sm:$0x3] }
   0x9   :  { %v82_v26 = vrot.slane %v26_v24, %v81_v21  ;;  %v58_v27 = vrot.slane %v26_v24, %v57_v22  ;;  %v245_v59 = vld [vmem:[%s569_s5] sm:$0xff] }
   0xa   :  { %429 = vset.pattern.permute.xlu0 %v441_v1  ;;  %420 = vmatprep.mubr.msk.f32.mxu1 %vm147_vm0, %v245_v59 }
   0xb   :  { %428 = vset.pattern.permute.xlu1 %v441_v1  ;;  %52 = vperm.xlu0 %429, %v30_v2  }
   0xc   :  { %42 = vperm.xlu1 %428, %v28_v4  }
   0xf   :  { %37 = vperm.xlu0 %429, %v27_v5  }
  0x10   :  { %108 = vperm.xlu1 %428, %v34_v6  }
  0x13   :  { %98 = vperm.xlu0 %429, %v32_v7  }
  0x14   :  { %430 = vset.pattern.permute.xlu1 %v440_v0 }
  0x15   :  { %64 = vperm.xlu1 %430, %v27_v5  }
  0x17   :  { %144 = vperm.xlu0 %429, %v126_v8   ;;  %v246_v8 = vld [vmem:[%s569_s5 + $0x8] sm:$0x3] }
  0x19   :  { %431 = vset.pattern.permute.xlu1 %v441_v1 }
  0x1a   :  { %103 = vperm.xlu1 %431, %v33_v9  }
  0x1b   :  { %134 = vperm.xlu0 %429, %v124_v10  }
  0x1e   :  { %93 = vperm.xlu1 %431, %v31_v11  }
  0x1f   :  { %251 = vperm.xlu0 %429, %v247_v12  }
  0x22   :  { %139 = vperm.xlu1 %431, %v125_v14  }
  0x26   :  { %129 = vperm.xlu1 %431, %v123_v15  }
  0x2a   :  { %256 = vperm.xlu1 %431, %v248_v16  }
  0x7d   :  { %v48_v19 = vpop.permute.xlu1 %47  ;;  %v77_v20 = vpop.permute.xlu0 %76 }
  0x7e   :  { %v86_v28 = vmul.f32 %v82_v26, %v77_v20  ;;  %v61_v41 = vmul.f32 %v58_v27, %v48_v19 }
  0x81   :  { %v69_v23 = vpop.permute.xlu0 %68 }
  0x82   :  { %v73_v25 = vpop.permute.xlu1 %72  ;;  %v84_v38 = vmul.f32 %v82_v26, %v69_v23 }
  0x83   :  { %v85_v37 = vmul.f32 %v82_v26, %v73_v25 }
  0x85   :  { %v89_v46 = vadd.f32 %v85_v37, %v61_v41 }
  0x86   :  { %v53_v29 = vpop.permute.xlu0 %52 }
  0x87   :  { %v62_v30 = vmul.f32 %v58_v27, %v53_v29  ;;  %v43_v31 = vpop.permute.xlu1 %42 }
  0x88   :  { %v60_v39 = vmul.f32 %v58_v27, %v43_v31 }
  0x89   :  { %v90_v32 = vadd.f32 %v86_v28, %v62_v30 }
  0x8a   :  { %v38_v35 = vpop.permute.xlu0 %37  ;;  %v88_v44 = vadd.f32 %v84_v38, %v60_v39 }
  0x8b   :  { %v109_v33 = vpop.permute.xlu1 %108  ;;  %v59_v43 = vmul.f32 %v58_v27, %v38_v35 }
  0x8c   :  { %v114_v34 = vadd.f32 %v109_v33, %v90_v32 }
  0x8e   :  { %v118_v36 = vmax.f32 %v114_v34, 0.0  ;;  %v99_v42 = vpop.permute.xlu0 %98 }
  0x8f   :  { %v112_v48 = vadd.f32 %v99_v42, %v88_v44 }
  0x90   :  { %v65_v40 = vpop.permute.xlu1 %64  ;;  %398 = vmatprep.subr.mxu0 %v118_v36 }
  0x91   :  { %399 = vmatpush3.msra.mxu0 %v118_v36  ;;  %v83_v45 = vmul.f32 %v82_v26, %v65_v40  ;;  %v116_v53 = vmax.f32 %v112_v48, 0.0 }
  0x92   :  { %v145_v61 = vpop.permute.xlu0 %144 }
  0x93   :  { %v87_v51 = vadd.f32 %v83_v45, %v59_v43 }
  0x95   :  { %v104_v47 = vpop.permute.xlu1 %103 }
  0x96   :  { %v113_v49 = vadd.f32 %v104_v47, %v89_v46  ;;  %v135_v4 = vpop.permute.xlu0 %134 }
  0x98   :  { %v117_v50 = vmax.f32 %v113_v49, 0.0 }
  0x99   :  { %v94_v52 = vpop.permute.xlu1 %93 }
  0x9a   :  { %v111_v54 = vadd.f32 %v94_v52, %v87_v51  ;;  %400 = vmatprep.subr.mxu0 %v117_v50  ;;  %v252_v12 = vpop.permute.xlu0 %251 }
  0x9b   :  { %401 = vmatpush3.msra.mxu0 %v117_v50 }
  0x9c   :  { %v115_v55 = vmax.f32 %v111_v54, 0.0  ;;  %402 = vmatprep.subr.mxu0 %v116_v53 }
  0x9d   :  { %403 = vmatpush3.msra.mxu0 %v116_v53  ;;  %v140_v63 = vpop.permute.xlu1 %139 }
  0x9e   :  { %404 = vmatprep.subr.mxu0 %v115_v55 }
  0x9f   :  { %405 = vmatpush3.msra.mxu0 %v115_v55 }
  0xa0   :  { %407 = vmatmul.mubr.msk.f32.vlgmr.msra.gmra.mxu0 %vm147_vm0, %v120_v56 }
  0xa1   :  { %409 = vmatprep.mubr.msk.f32.mxu0 %vm147_vm0, %v121_v57  ;;  %v130_v6 = vpop.permute.xlu1 %129 }
  0xa4   :  { %410 = vmatmul.mubr.msk.f32.gmra.mxu0 %vm147_vm0, %v122_v58 }
  0xa5   :  { %v257_v9 = vpop.permute.xlu1 %256 }
 0x160   :  { %v408_v60 = vpop.f32.mrf.mxu0 }
 0x161   :  { %v232_v5 = vadd.f32 %v408_v60, %v135_v4 }
 0x162   :  { %v226_v62 = vpop.f32.mrf.mxu0 }
 0x163   :  { %v227_v7 = vadd.f32 %v226_v62, %v130_v6 }
 0x164   :  { %v411_v0 = vpop.f32.mrf.mxu0 }
 0x165   :  { %v242_v1 = vadd.f32 %v411_v0, %v145_v61 }
 0x166   :  { %v236_v2 = vpop.f32.mrf.mxu0 }
 0x167   :  { %v237_v3 = vadd.f32 %v236_v2, %v140_v63  ;;  %412 = vmatprep.subr.mxu1 %v242_v1 }
 0x168   :  { %413 = vmatpush3.msra.mxu1 %v242_v1 }
 0x169   :  { %414 = vmatprep.subr.mxu1 %v237_v3 }
 0x16a   :  { %415 = vmatpush3.msra.mxu1 %v237_v3 }
 0x16b   :  { %416 = vmatprep.subr.mxu1 %v232_v5 }
 0x16c   :  { %417 = vmatpush3.msra.mxu1 %v232_v5 }
 0x16d   :  { %418 = vmatprep.subr.mxu1 %v227_v7 }
 0x16e   :  { %419 = vmatpush3.msra.mxu1 %v227_v7 }
 0x16f   :  { %421 = vmatmul.mubr.msk.f32.vlgmr.msra.gmra.mxu1 %vm147_vm0, %v246_v8 }
 0x22f   :  { %v422_v10 = vpop.f32.mrf.mxu1 }
 0x230   :  { %v337_v11 = vadd.f32 %v422_v10, %v257_v9 }
 0x231   :  { %v331_v13 = vpop.f32.mrf.mxu1 }
 0x232   :  { %341 = vst [vmem:[%s570_s7 + $0x8] sm:$0x3] %v337_v11  ;;  %v360_v14 = vmin.f32 %v337_v11, 20.0  ;;  %v332_v15 = vadd.f32 %v331_v13, %v252_v12  ;;  %vm359_vm2 = vcmp.gt.f32.partialorder %v337_v11, 20.0 }
 0x234   :  { %v361_v16 = vmul.f32 1.442695, %v360_v14  ;;  %340 = vst [vmem:[%s570_s7] sm:$0xff] %v332_v15  ;;  %v343_v17 = vmin.f32 %v332_v15, 20.0  ;;  %vm342_vm4 = vcmp.gt.f32.partialorder %v332_v15, 20.0 }
 0x236   :  { %432 = vpow2.f32 %v361_v16  ;;  %v344_v18 = vmul.f32 1.442695, %v343_v17 }
 0x238   :  { %434 = vpow2.f32 %v344_v18 }
 0x243   :  { %v433_v19 = vpop.eup %432 }
 0x244   :  { %v363_v20 = vadd.f32 1.0, %v433_v19  ;;  %v366_v23 = vmul.f32 -0.5, %v433_v19  ;;  %v369_v26 = vand.u32 2147483647, %v433_v19 }
 0x245   :  { %v435_v21 = vpop.eup %434 }
 0x246   :  { %436 = vlog2.f32 %v363_v20  ;;  %v346_v22 = vadd.f32 1.0, %v435_v21  ;;  %v349_v24 = vmul.f32 -0.5, %v435_v21  ;;  %v367_v25 = vadd.f32 1.0, %v366_v23 }
 0x247   :  { %v352_v29 = vand.u32 2147483647, %v435_v21  ;;  %vm370_vm1 = vcmp.lt.f32.partialorder %v369_v26, 0.0004427343 }
 0x248   :  { %438 = vlog2.f32 %v346_v22  ;;  %v350_v27 = vadd.f32 1.0, %v349_v24  ;;  %v368_v31 = vmul.f32 %v433_v19, %v367_v25 }
 0x249   :  { %vm353_vm3 = vcmp.lt.f32.partialorder %v352_v29, 0.0004427343 }
 0x24a   :  { %v351_v35 = vmul.f32 %v435_v21, %v350_v27 }
 0x253   :  { %v437_v28 = vpop.eup %436 }
 0x254   :  { %v365_v30 = vmul.f32 0.6931472, %v437_v28 }
 0x255   :  { %v439_v32 = vpop.eup %438 }
 0x256   :  { %v371_v33 = vsel %vm370_vm1, %v368_v31, %v365_v30  ;;  %v348_v34 = vmul.f32 0.6931472, %v439_v32 }
 0x257   :  { %v372_v36 = vsel %vm359_vm2, %v337_v11, %v371_v33 }
 0x258   :  { %373 = vst [vmem:[%s570_s7 + $0x8] sm:$0x2] %v372_v36  ;;  %v354_v37 = vsel %vm353_vm3, %v351_v35, %v348_v34 }
 0x259   :  { %v355_v38 = vsel %vm342_vm4, %v332_v15, %v354_v37 }
 0x25a   :  { %356 = vst [vmem:[%s570_s7] ss:$4 sps:$4 sm:$0x25] %v355_v38  }

</bundles_post_ra>
